<compile_context>
chip_gen: v7x
topology: tpu7x:2x2x1
jax: 0.10.0
libtpu: 0.0.40
codegen_flags: <defaults>
</compile_context>

<pallas_src>
import jax
import jax.numpy as jnp
from jax.experimental import pallas as pl
from jax.experimental.pallas import tpu as pltpu


def _round_up(n: int, m: int) -> int:
    return ((n + m - 1) // m) * m


def _vmem_budget(tb: int, d: int, h: int) -> int:
    """Rough double-buffered VMEM footprint, with headroom, capped for v7x."""
    x_bytes = 2 * tb * d * 2          # bf16 x tile, 2 pipeline buffers
    w1_bytes = 2 * d * h * 2          # bf16 w1 (resident, 2 buffers allocated)
    vec_bytes = 2 * 2 * h * 4         # b1 + w2^T rows (f32), 2 buffers each
    out_bytes = 2 * tb * 4            # f32 score column, 2 buffers
    need = x_bytes + w1_bytes + vec_bytes + out_bytes
    return int(min(max(2 * need, 4 * 1024 * 1024), 48 * 1024 * 1024))


def relevance_kernel(x_ref, w1_ref, b1_ref, w2t_ref, b2_ref, o_ref):
    # Layer 1 on the MXU: bf16 x bf16 inputs, f32 accumulation.
    h = jnp.dot(x_ref[...], w1_ref[...], preferred_element_type=jnp.float32)
    # Bias + ReLU on the VPU in f32 (v5e has no bf16 elementwise path).
    h = jnp.maximum(h + b1_ref[...], 0.0)

    # Layer 2 (H -> 1): VPU multiply + lane reduction instead of an N=1 MXU
    # matmul (which would use 1/256 of the MXU output width).
    logits = jnp.sum(h * w2t_ref[...], axis=-1, keepdims=True)   # (TB, 1) f32
    logits = logits + b2_ref[0, 0]                               # SMEM scalar

    o_ref[...] = jax.nn.sigmoid(logits).astype(o_ref.dtype)


def relevance_forward(x, w1, b1, w2, b2, *, block_rows=512):
    """sigmoid(relu(x @ w1 + b1) @ w2 + b2) as a tiled Pallas TPU kernel."""
    B, D = x.shape
    H = w1.shape[1]

    # Batch tile: multiple of 16 (bf16 sublane tile); largest that is useful.
    tb = min(block_rows, _round_up(B, 16))
    tb = max(16, _round_up(tb, 16))
    Bp = _round_up(B, tb)

    # MXU operands in bf16; everything else stays f32.
    x_bf = x.astype(jnp.bfloat16)
    if Bp != B:
        x_bf = jnp.pad(x_bf, ((0, Bp - B), (0, 0)))
    w1_bf = w1.astype(jnp.bfloat16)
    b1_f = b1.reshape(1, H).astype(jnp.float32)
    w2t_f = w2.reshape(1, H).astype(jnp.float32)     # transposed for VPU reduce
    b2_s = b2.reshape(1, 1).astype(jnp.float32)      # scalar, lives in SMEM

    grid = (Bp // tb,)
    flops = 2 * Bp * D * H + 3 * Bp * H               # GEMM + mul/add reduce
    bytes_accessed = (x_bf.size * 2 + w1_bf.size * 2
                      + (b1_f.size + w2t_f.size + b2_s.size) * 4 + Bp * 4)

    out = pl.pallas_call(
        relevance_kernel,
        out_shape=jax.ShapeDtypeStruct((Bp, 1), jnp.float32),
        grid_spec=pl.GridSpec(
            grid=grid,
            in_specs=[
                pl.BlockSpec((tb, D), lambda i: (i, 0)),     # x: pipelined tiles
                pl.BlockSpec((D, H), lambda i: (0, 0)),      # w1: VMEM-resident
                pl.BlockSpec((1, H), lambda i: (0, 0)),      # b1: resident
                pl.BlockSpec((1, H), lambda i: (0, 0)),      # w2^T: resident
                pl.BlockSpec(memory_space=pltpu.MemorySpace.SMEM),  # b2 scalar
            ],
            out_specs=pl.BlockSpec((tb, 1), lambda i: (i, 0)),
        ),
        compiler_params=pltpu.CompilerParams(
            dimension_semantics=("parallel",),
            vmem_limit_bytes=_vmem_budget(tb, D, H),
        ),
        cost_estimate=pl.CostEstimate(
            flops=flops, transcendentals=Bp, bytes_accessed=bytes_accessed),
    )(x_bf, w1_bf, b1_f, w2t_f, b2_s)

    return out[:B]


def reference_forward(x, w1, b1, w2, b2):
    # Same precision recipe as the kernel: bf16 MXU operands, f32 accumulate.
    h = jnp.dot(x.astype(jnp.bfloat16), w1.astype(jnp.bfloat16),
                preferred_element_type=jnp.float32)
    h = jnp.maximum(h + b1.reshape(1, -1).astype(jnp.float32), 0.0)
    logits = h @ w2.astype(jnp.float32) + b2.reshape(1, 1).astype(jnp.float32)
    return jax.nn.sigmoid(logits)


if __name__ == "__main__":
    # Small shapes; B deliberately NOT a multiple of the tile to exercise the
    # pad-and-slice path, D/H lane-aligned (128).
    B, D, H = 200, 128, 128

    key = jax.random.PRNGKey(0)
    kx, kw1, kb1, kw2, kb2 = jax.random.split(key, 5)

    x = jax.random.normal(kx, (B, D), dtype=jnp.float32)
    w1 = jax.random.normal(kw1, (D, H), dtype=jnp.float32) * (1.0 / jnp.sqrt(D))
    b1 = jax.random.normal(kb1, (1, H), dtype=jnp.float32) * 0.01
    w2 = jax.random.normal(kw2, (H, 1), dtype=jnp.float32) * (1.0 / jnp.sqrt(H))
    b2 = jax.random.normal(kb2, (1, 1), dtype=jnp.float32) * 0.01

    out = relevance_forward(x, w1, b1, w2, b2, block_rows=128)  # grid = (2,)
    out = jax.block_until_ready(out)

    ref = reference_forward(x, w1, b1, w2, b2)
    assert out.shape == (B, 1), out.shape
    assert jnp.allclose(out, ref, atol=1e-3, rtol=1e-3), "mismatch vs reference"

    print("KERNEL_OK")
</pallas_src>

<mosaic_0001>
module attributes {stable_mosaic.version = 11 : i64} {
  func.func @relevance_kernel(%arg0: i32, %arg1: memref<128x128xbf16, #tpu.memory_space<vmem>>, %arg2: memref<128x128xbf16, #tpu.memory_space<vmem>>, %arg3: memref<1x128xf32, #tpu.memory_space<vmem>>, %arg4: memref<1x128xf32, #tpu.memory_space<vmem>>, %arg5: memref<1x1xf32, #tpu.memory_space<smem>>, %arg6: memref<128x1xf32, #tpu.memory_space<vmem>>) attributes {dimension_semantics = [#tpu.dimension_semantics<parallel>], iteration_bounds = array<i64: 2>, scalar_prefetch = 0 : i64, scratch_operands = 0 : i64, tpu.core_type = #tpu.core_type<tc>, window_params = [{transform_indices = @transform_0, window_bounds = array<i64: 128, 128>}, {pipeline_mode = #tpu.pipeline_mode<synchronous>, transform_indices = @transform_1, window_bounds = array<i64: 128, 128>}, {pipeline_mode = #tpu.pipeline_mode<synchronous>, transform_indices = @transform_2, window_bounds = array<i64: 1, 128>}, {pipeline_mode = #tpu.pipeline_mode<synchronous>, transform_indices = @transform_3, window_bounds = array<i64: 1, 128>}, {transform_indices = @transform_4, window_bounds = array<i64: 1, 1>}, {transform_indices = @transform_5, window_bounds = array<i64: 128, 1>}]} {
    %c0 = arith.constant 0 : index
    %c0_0 = arith.constant 0 : index
    %0 = vector.load %arg1[%c0, %c0_0] : memref<128x128xbf16, #tpu.memory_space<vmem>>, vector<128x128xbf16>
    %c0_1 = arith.constant 0 : index
    %c0_2 = arith.constant 0 : index
    %1 = vector.load %arg2[%c0_1, %c0_2] : memref<128x128xbf16, #tpu.memory_space<vmem>>, vector<128x128xbf16>
    %cst = arith.constant dense<0.000000e+00> : vector<128x128xf32>
    %2 = tpu.matmul %0, %1, %cst {dimension_numbers = #tpu.dot_dimension_numbers<[1], [0], [0], [1], [0, 0, 1, 1], [], []>} : vector<128x128xbf16>, vector<128x128xbf16>, vector<128x128xf32> -> vector<128x128xf32>
    %c0_3 = arith.constant 0 : index
    %c0_4 = arith.constant 0 : index
    %3 = vector.load %arg3[%c0_3, %c0_4] : memref<1x128xf32, #tpu.memory_space<vmem>>, vector<1x128xf32>
    %4 = vector.broadcast %3 : vector<1x128xf32> to vector<128x128xf32>
    %5 = arith.addf %2, %4 : vector<128x128xf32>
    %cst_5 = arith.constant 0.000000e+00 : f32
    %6 = vector.broadcast %cst_5 : f32 to vector<128x128xf32>
    %7 = arith.maximumf %5, %6 : vector<128x128xf32>
    %c0_6 = arith.constant 0 : index
    %c0_7 = arith.constant 0 : index
    %8 = vector.load %arg4[%c0_6, %c0_7] : memref<1x128xf32, #tpu.memory_space<vmem>>, vector<1x128xf32>
    %9 = vector.broadcast %8 : vector<1x128xf32> to vector<128x128xf32>
    %10 = arith.mulf %7, %9 : vector<128x128xf32>
    %cst_8 = arith.constant dense<0.000000e+00> : vector<128xf32>
    %11 = vector.multi_reduction <add>, %10, %cst_8 [1] : vector<128x128xf32> to vector<128xf32>
    %12 = vector.shape_cast %11 : vector<128xf32> to vector<128x1xf32>
    %c0_9 = arith.constant 0 : index
    %c0_10 = arith.constant 0 : index
    %13 = memref.load %arg5[%c0_9, %c0_10] : memref<1x1xf32, #tpu.memory_space<smem>>
    %14 = vector.broadcast %13 : f32 to vector<128x1xf32>
    %15 = arith.addf %12, %14 : vector<128x1xf32>
    %16 = arith.negf %15 : vector<128x1xf32>
    %17 = math.exp %16 : vector<128x1xf32>
    %cst_11 = arith.constant 1.000000e+00 : f32
    %18 = vector.broadcast %cst_11 : f32 to vector<128x1xf32>
    %19 = arith.addf %18, %17 : vector<128x1xf32>
    %20 = arith.divf %18, %19 : vector<128x1xf32>
    %c0_12 = arith.constant 0 : index
    %c0_13 = arith.constant 0 : index
    %21 = vector.load %arg6[%c0_12, %c0_13] : memref<128x1xf32, #tpu.memory_space<vmem>>, vector<128x1xf32>
    tpu.vector_store %arg6[%c0_12, %c0_13], %20 {strides = array<i32>} : memref<128x1xf32, #tpu.memory_space<vmem>>, vector<128x1xf32>,
    return
  }
  func.func @transform_0(%arg0: i32) -> (i32, i32) {
    %c0_i32 = arith.constant 0 : i32
    %c0_i32_0 = arith.constant 0 : i32
    return %arg0, %c0_i32 : i32, i32
  }
  func.func @transform_1(%arg0: i32) -> (i32, i32) {
    %c0_i32 = arith.constant 0 : i32
    %c0_i32_0 = arith.constant 0 : i32
    %c0_i32_1 = arith.constant 0 : i32
    return %c0_i32, %c0_i32_0 : i32, i32
  }
  func.func @transform_2(%arg0: i32) -> (i32, i32) {
    %c0_i32 = arith.constant 0 : i32
    %c0_i32_0 = arith.constant 0 : i32
    %c0_i32_1 = arith.constant 0 : i32
    return %c0_i32, %c0_i32_0 : i32, i32
  }
  func.func @transform_3(%arg0: i32) -> (i32, i32) {
    %c0_i32 = arith.constant 0 : i32
    %c0_i32_0 = arith.constant 0 : i32
    %c0_i32_1 = arith.constant 0 : i32
    return %c0_i32, %c0_i32_0 : i32, i32
  }
  func.func @transform_4(%arg0: i32) -> (i32, i32) {
    %c0_i32 = arith.constant 0 : i32
    %c0_i32_0 = arith.constant 0 : i32
    %c0_i32_1 = arith.constant 0 : i32
    return %c0_i32, %c0_i32_0 : i32, i32
  }
  func.func @transform_5(%arg0: i32) -> (i32, i32) {
    %c0_i32 = arith.constant 0 : i32
    %c0_i32_0 = arith.constant 0 : i32
    return %arg0, %c0_i32 : i32, i32
  }
}

</mosaic_0001>

<bundles_post_ra>
// kernel: tpu_custom_call.1
= control target key start
LH: loop header
LB: loop body
LE: loop exit
PB: predicated region body
PF: predicated region fallthrough
CT: control target
= control target key end

     0   :  { %s1414_s0 = inlined_call_operand.hbm [shape: bf16[256,128], index: 0, kind: input, shape index: {}]   ;;  %s1415_s1 = inlined_call_operand.hbm [shape: bf16[128,128], index: 1, kind: input, shape index: {}]   ;;  %s1416_s2 = inlined_call_operand.vmem [shape: f32[1,128], index: 2, kind: input, shape index: {}]   ;;  %s1417_s3 = inlined_call_operand.vmem [shape: f32[1,128], index: 3, kind: input, shape index: {}]   ;;  %s1418_s4 = inlined_call_operand.<no memory space> [shape: f32[1,1], index: 4, kind: input, shape index: {}]   ;;  %s1419_s5 = inlined_call_operand.vmem [shape: f32[256,1], index: 5, kind: output, shape index: {}]  }
   0x1   :  { %10 = sst [smem:[#allocation2]] %s1418_s4 }
   0x2   :  { %11 = vsyncpa [#allocation4], 0 }
   0x3   :  { %13 = vsyncpa [#allocation4 + $0x1], 0 }
   0x4   :  { %14 = vsyncpa [#allocation6], 0  ;;  %s1156_s20 = smov 0   ;;  %s1158_s21 = smov 0  }
   0x5   :  { %s1160_s22 = smov 0   ;;  %s1162_s23 = smov 0  }
   0x6 LB: > { %s775_s4 = sadd.s32 4294967295, %s1117_s23   ;;  %p40_p0 = scmp.ne.s32.totalorder %s1109_s21, %s1105_s20  ;;  %s1117_s23 = sphi %s1162_s23, %s1436_s23   ;;  %s1113_s22 = sphi %s1160_s22, %s1435_s22   ;;  %s1109_s21 = sphi %s1158_s21, %s1434_s21   ;;  %s1105_s20 = sphi %s1156_s20, %s1433_s20  }
   0x7   : > { %p1178_p1 = scmp.eq.s32.totalorder %s775_s4, 0  ;;  %p777_p2 = scmp.ge.s32.totalorder %s1117_s23, 1 }
   0x8   : > { %p161_p3 = scmp.lt.s32.totalorder %s1117_s23, 3  ;;  %s1119_s27 = smov [#allocation5]  }
   0x9   : > { %s1424_s24 = scalar_select %p1178_p1, 1, 0 }
   0xa   : > { %p1186_p4 = por %p1178_p1, %p40_p0  ;;  %p1190_p5 = pnand %p777_p2, %p161_p3 }
   0xb   : > { %s173_s28 = sshll.u32 %s1119_s27, 4  ;;  %s1203_s30 = sadd.s32 1, %s1117_s23   ;;  %s174_s28 = int_to_ptr.vmem [resolvable:$true] %s173_s28 }
   0xc   : > { %s1425_s25 = scalar_select %p1186_p4, 1, 0 }
   0xd   : > { %s1426_s26 = scalar_select %p1190_p5, 1, 0 }
   0xe   : > { %p895_p6 = pneg %p1190_p5  ;;  %s27_s6 = sadd.s32 1, %s1113_s22 }
   0xf   : > { %s24_s7 = ssub.s32 %s1117_s23, %s1203_s30  ;;  %s1021_s10 = scalar_lea.hbm %s1415_s1, 1024 }
  0x10   : > { %p1198_p7 = pnand %p895_p6, %p1178_p1  ;;  %p1022_p8 = scmp.ne.s32.totalorder %s1415_s1, %s1021_s10 }
  0x11   : > { %p1028_p12 = scmp.lt.u32.totalorder %s1021_s10, %s1415_s1 }
  0x12   : > { %p1023_p9 = pneg %p1198_p7 }
  0x14   : > { %p1024_p10 = pnand %p1023_p9, %p1022_p8 }
  0x16   : > { %p1025_p11 = pneg %p1024_p10 }
  0x18   : > { %p1030_p13 = pnand %p1028_p12, %p1025_p11 }
  0x1a   : > { %1033 = shalt.err (!%p1030_p13)
}
  0x1b   : > { %s1034_s15 = scalar_lea.vmem %s174_s28, 1024  ;;  %p1042_p6 = scmp.lt.s32.totalorder %s174_s28, %s174_s28 }
  0x1c   : > { %p1035_p0 = scmp.ne.s32.totalorder %s174_s28, %s1034_s15  ;;  %p1043_p1 = scmp.lt.s32.totalorder %s1034_s15, %s1034_s15 }
  0x1e   : > { %p1037_p2 = pnand %p1035_p0, %p1023_p9  ;;  %p1044_p4 = por %p1043_p1, %p1042_p6 }
  0x20   : > { %p1038_p3 = pneg %p1037_p2 }
  0x22   : > { %p1045_p5 = pnand %p1044_p4, %p1038_p3 }
  0x24   : > { %1048 = shalt.err (!%p1045_p5)
}
  0x25   : > { %s1120_s16 = smov 64   ;;  %s1121_s17 = smov 4  }
  0x26   : > { %898 = dma.hbm_to_vmem [thread:$0]  (!%p1198_p7), %s1415_s1, 1024, %s174_s28, [#allocation6], %s1120_s16, %s1120_s16, %s1121_s17  }
  0x27   : > { %p25_p1 = scmp.eq.s32.totalorder %s24_s7, 0  ;;  %p34_p4 = scmp.ne.s32.totalorder %s1113_s22, %s1109_s21 }
  0x28   : > { %p35_p5 = scmp.eq.s32.totalorder %s1117_s23, 0  ;;  %p904_p8 = scmp.lt.s32.totalorder %s1117_s23, 2 }
  0x29   : > { %s1232_s20 = scalar_select %p25_p1, %s1113_s22, %s27_s6  }
  0x2a   : > { %p36_p9 = por %p35_p5, %p34_p4  ;;  %s196_s27 = sand.u32 1, %s1113_s22  }
  0x2b   : > { %s780_s8 = sshll.u32 %s196_s27, 6  ;;  %s824_s9 = sshll.u32 %s1117_s23, 10 }
  0x2c   : > { %s1239_s29 = scalar_lea.hbm %s1414_s0, %s824_s9  ;;  %s200_s28 = scalar_lea.vmem [#allocation3], %s780_s8 }
  0x2d   : > { %s207_s7 = sshll.u32 %s200_s28, 4  ;;  %p1243_p7 = pnand %p904_p8, %p36_p9  ;;  %s1241_s7 = int_to_ptr.vmem [resolvable:$true] %s207_s7 }
  0x2e   : > { %s1247_s12 = scalar_lea.sflag [#allocation4], %s196_s27  ;;  %s1049_s13 = scalar_lea.hbm %s1239_s29, 1024 }
  0x2f   : > { %p1050_p10 = scmp.ne.s32.totalorder %s1239_s29, %s1049_s13  ;;  %p1051_p11 = pneg %p1243_p7 }
  0x30   : > { %s1054_s18 = scalar_lea.hbm %s1414_s0, 2048  ;;  %p1055_p0 = scmp.lt.u32.totalorder %s1239_s29, %s1414_s0 }
  0x31   : > { %p1052_p12 = pnand %p1051_p11, %p1050_p10  ;;  %p1056_p2 = scmp.lt.u32.totalorder %s1054_s18, %s1049_s13 }
  0x32   : > { %p1058_p6 = scmp.lt.u32.totalorder %s1049_s13, %s1239_s29 }
  0x33   : > { %p1053_p13 = pneg %p1052_p12  ;;  %p1057_p3 = por %p1056_p2, %p1055_p0 }
  0x35   : > { %p1059_p1 = por %p1058_p6, %p1057_p3 }
  0x37   : > { %p1060_p4 = pnand %p1059_p1, %p1053_p13 }
  0x39   : > { %1063 = shalt.err (!%p1060_p4)
}
  0x3a   : > { %s1064_s27 = scalar_lea.vmem %s1241_s7, 1024  ;;  %s1122_s9 = smov [#allocation3]  }
  0x3b   : > { %p1065_p5 = scmp.ne.s32.totalorder %s1241_s7, %s1064_s27  ;;  %s1069_s10 = sshll.u32 %s1122_s9, 4  ;;  %s1070_s10 = int_to_ptr.vmem [resolvable:$false] %s1069_s10 }
  0x3c   : > { %s1071_s11 = scalar_lea.vmem %s1070_s10, 2048  ;;  %p1072_p10 = scmp.lt.s32.totalorder %s1241_s7, %s1070_s10 }
  0x3d   : > { %p1067_p8 = pnand %p1065_p5, %p1051_p11  ;;  %p1073_p12 = scmp.lt.s32.totalorder %s1071_s11, %s1064_s27 }
  0x3f   : > { %p1068_p9 = pneg %p1067_p8  ;;  %p1074_p0 = por %p1073_p12, %p1072_p10 }
  0x41   : > { %p1075_p2 = pnand %p1074_p0, %p1068_p9 }
  0x43   : > { %1078 = shalt.err (!%p1075_p2)
}
  0x44   : > { %902 = dma.hbm_to_vmem [thread:$0]  (!%p1243_p7), %s1239_s29, 1024, %s1241_s7, %s1247_s12, %s1120_s16, %s1120_s16, %s1121_s17  }
  0x45   : > { %p1429_p11 = scmp.ne.s32.totalorder %s1426_s26, 0 }
  0x46   : > { %s221_s28 = sand.u32 (!%p1429_p11), 1, %s1109_s21   ;;  %p1430_p13 = scmp.ne.s32.totalorder (!%p1429_p11), %s1425_s25, 0 }
  0x47   : > { %219 = sbr.rel (%p1429_p11) target bundleno = 535 (0x217), region = 40  ;;  %s784_s13 = sshll.u32 (!%p1429_p11), %s221_s28, 6 }
  0x48   : > { %s222_s14 = scalar_lea.sflag (!%p1429_p11), [#allocation4], %s221_s28  ;;  %s1281_s15 = scalar_lea.vmem (!%p1429_p11), [#allocation3], %s784_s13 }
  0x4e   : > { %1096 = dma.done.wait (%p1430_p13), %s222_s14, 1024  }
  0x4f   : > { %1098 = vsyncadd (%p1430_p13), %s222_s14, 4294966272  ;;  %p1431_p3 = scmp.ne.s32.totalorder %s1424_s24, 0 }
  0x51   : > { %1100 = dma.done.wait (%p1431_p3), [#allocation6], 1024  }
  0x52   : > { %1102 = vsyncadd (%p1431_p3), [#allocation6], 4294966272  ;;  %v941_v0 = vld [vmem:[#allocation5] sm:$0xff]   ;;  %v942_v1 = vld [vmem:[#allocation5 + $0x8] sm:$0xff]   ;;  %s567_s17 = sld [smem:[#allocation2]]  ;;  %s786_s29 = sshll.u32 %s775_s4, 4 }
  0x53   : > { %841 = vmatprep.subr.bf16.mxu0 %v941_v0  ;;  %873 = vmatprep.subr.bf16.mxu1 %v941_v0  ;;  %v943_v2 = vld [vmem:[#allocation5 + $0x10] sm:$0xff]   ;;  %v944_v3 = vld [vmem:[#allocation5 + $0x18] sm:$0xff]   ;;  %v949_v4 = vld [vmem:[%s1281_s15] sm:$0xff]   ;;  %p258_p7 = scmp.lt.s32.totalorder %s786_s29, 31  ;;  %vm681_vm0 = vcmask 7168  }
  0x54   : > { %842 = vmatpush3.bf16.msra.mxu0 %v941_v0  ;;  %881 = vmatpush3.bf16.msra.mxu1 %v941_v0  ;;  %v950_v5 = vld [vmem:[%s1281_s15 + $0x20] sm:$0xff]   ;;  %v946_v7 = vld [vmem:[#allocation5 + $0x28] sm:$0xff]   ;;  %v947_v8 = vld [vmem:[#allocation5 + $0x30] sm:$0xff]  }
  0x55   : > { %843 = vmatprep.subr.bf16.mxu0 %v942_v1  ;;  %874 = vmatprep.subr.bf16.mxu1 %v942_v1  ;;  %v945_v6 = vld [vmem:[#allocation5 + $0x20] sm:$0xff]   ;;  %v948_v9 = vld [vmem:[#allocation5 + $0x38] sm:$0xff]   ;;  %v951_v10 = vld [vmem:[%s1281_s15 + $0x8] sm:$0xff]   ;;  %s1438_s29 = smov (!%p258_p7, %s786_s29), 31 }
  0x56   : > { %857 = vmatprep.mubr.bf16.mxu0 %v949_v4  ;;  %865 = vmatprep.mubr.bf16.mxu1 %v950_v5  ;;  %v952_v11 = vld [vmem:[%s1281_s15 + $0x28] sm:$0xff]   ;;  %v953_v12 = vld [vmem:[%s1281_s15 + $0x10] sm:$0xff]   ;;  %v954_v14 = vld [vmem:[%s1281_s15 + $0x18] sm:$0xff]   ;;  %s787_s23 = sshll.u32 %s1438_s29, 3 }
  0x57   : > { %v955_v13 = vld [vmem:[%s1281_s15 + $0x30] sm:$0xff]   ;;  %v956_v15 = vld [vmem:[%s1281_s15 + $0x38] sm:$0xff]   ;;  %v1302_v16 = vld [vmem:[%s1416_s2] ss:$0 sm:$0xff]  ;;  %s1365_s6 = scalar_lea.vmem %s1419_s5, %s787_s23 }
  0x58   : > { %844 = vmatpush3.bf16.msra.mxu0 %v942_v1  ;;  %882 = vmatpush3.bf16.msra.mxu1 %v942_v1  ;;  %v1310_v26 = vld [vmem:[%s1417_s3] ss:$0 sm:$0xff] }
  0x59   : > { %845 = vmatprep.subr.bf16.mxu0 %v943_v2  ;;  %875 = vmatprep.subr.bf16.mxu1 %v943_v2 }
  0x5c   : > { %846 = vmatpush3.bf16.msra.mxu0 %v943_v2  ;;  %883 = vmatpush3.bf16.msra.mxu1 %v943_v2 }
  0x5d   : > { %847 = vmatprep.subr.bf16.mxu0 %v944_v3  ;;  %876 = vmatprep.subr.bf16.mxu1 %v944_v3 }
  0x60   : > { %848 = vmatpush3.bf16.msra.mxu0 %v944_v3  ;;  %884 = vmatpush3.bf16.msra.mxu1 %v944_v3 }
  0x61   : > { %849 = vmatprep.subr.bf16.mxu0 %v945_v6  ;;  %877 = vmatprep.subr.bf16.mxu1 %v945_v6 }
  0x64   : > { %850 = vmatpush3.bf16.msra.mxu0 %v945_v6  ;;  %885 = vmatpush3.bf16.msra.mxu1 %v945_v6 }
  0x65   : > { %851 = vmatprep.subr.bf16.mxu0 %v946_v7  ;;  %878 = vmatprep.subr.bf16.mxu1 %v946_v7 }
  0x68   : > { %852 = vmatpush3.bf16.msra.mxu0 %v946_v7  ;;  %886 = vmatpush3.bf16.msra.mxu1 %v946_v7 }
  0x69   : > { %853 = vmatprep.subr.bf16.mxu0 %v947_v8  ;;  %879 = vmatprep.subr.bf16.mxu1 %v947_v8 }
  0x6c   : > { %854 = vmatpush3.bf16.msra.mxu0 %v947_v8  ;;  %887 = vmatpush3.bf16.msra.mxu1 %v947_v8 }
  0x6d   : > { %855 = vmatprep.subr.bf16.mxu0 %v948_v9  ;;  %880 = vmatprep.subr.bf16.mxu1 %v948_v9 }
  0x70   : > { %856 = vmatpush3.bf16.msra.mxu0 %v948_v9  ;;  %888 = vmatpush3.bf16.msra.mxu1 %v948_v9 }
  0x73   : > { %858 = vmatmul.mubr.bf16.vlgmr.msra.gmra.mrb[0].mxu0 %v951_v10  ;;  %866 = vmatmul.mubr.bf16.vlgmr.msra.gmra.mrb[0].mxu1 %v952_v11 }
  0x74   : > { %861 = vmatprep.mubr.bf16.mxu0 %v953_v12  ;;  %869 = vmatprep.mubr.bf16.mxu1 %v955_v13 }
  0x7b   : > { %862 = vmatmul.mubr.bf16.gmra.mrb[4].mxu0 %v954_v14  ;;  %870 = vmatmul.mubr.bf16.gmra.mrb[4].mxu1 %v956_v15 }
 0x146   : > { %v859_v17 = vpop.f32.mrb[0].mxu0  ;;  %v867_v18 = vpop.f32.mrb[0].mxu1 }
 0x147   : > { %v442_v19 = vadd.f32 %v859_v17, %v1302_v16  ;;  %v474_v20 = vadd.f32 %v867_v18, %v1302_v16  ;;  %v433_v21 = vpop.f32.mrb[1].mxu0  ;;  %v465_v22 = vpop.f32.mrb[1].mxu1  ;;  %v1341_v18 = vstv %s567_s17 }
 0x148   : > { %v434_v23 = vadd.f32 %v1302_v16, %v433_v21  ;;  %v860_v24 = vpop.f32.mrb[2].mxu0  ;;  %v868_v25 = vpop.f32.mrb[2].mxu1  ;;  %v466_v32 = vadd.f32 %v1302_v16, %v465_v22 }
 0x149   : > { %v498_v27 = vmax.f32 %v442_v19, 0.0  ;;  %v506_v28 = vmax.f32 %v474_v20, 0.0  ;;  %v445_v29 = vadd.f32 %v860_v24, %v1302_v16  ;;  %v436_v30 = vpop.f32.mrb[3].mxu0  ;;  %v468_v31 = vpop.f32.mrb[3].mxu1  ;;  %v477_v33 = vadd.f32 %v868_v25, %v1302_v16 }
 0x14a   : > { %v496_v34 = vmax.f32 %v434_v23, 0.0  ;;  %v437_v38 = vadd.f32 %v1302_v16, %v436_v30  ;;  %v469_v39 = vadd.f32 %v1302_v16, %v468_v31  ;;  %v504_v42 = vmax.f32 %v466_v32, 0.0 }
 0x14b   : > { %v499_v35 = vmax.f32 %v445_v29, 0.0  ;;  %v529_v36 = vmul.f32 %v1310_v26, %v506_v28  ;;  %v521_v37 = vmul.f32 %v1310_v26, %v498_v27  ;;  %v507_v43 = vmax.f32 %v477_v33, 0.0 }
 0x14c   : > { %v519_v45 = vmul.f32 %v1310_v26, %v496_v34  ;;  %v497_v52 = vmax.f32 %v437_v38, 0.0  ;;  %v505_v53 = vmax.f32 %v469_v39, 0.0  ;;  %v527_v57 = vmul.f32 %v1310_v26, %v504_v42 }
 0x14d   : > { %555 = vadd.xlane.f32.xlu0 %v529_v36  ;;  %539 = vadd.xlane.f32.xlu1 %v521_v37  ;;  %v522_v44 = vmul.f32 %v1310_v26, %v499_v35  ;;  %v530_v56 = vmul.f32 %v1310_v26, %v507_v43 }
 0x14e   : > { %v863_v40 = vpop.f32.mrb[4].mxu0  ;;  %v871_v41 = vpop.f32.mrb[4].mxu1  ;;  %v528_v59 = vmul.f32 %v1310_v26, %v505_v53  ;;  %v520_v63 = vmul.f32 %v1310_v26, %v497_v52 }
 0x14f   : > { %v449_v46 = vpop.f32.mrb[5].mxu0  ;;  %v481_v47 = vpop.f32.mrb[5].mxu1  ;;  %v458_v54 = vadd.f32 %v863_v40, %v1302_v16  ;;  %v490_v6 = vadd.f32 %v871_v41, %v1302_v16 }
 0x150   : > { %v864_v48 = vpop.f32.mrb[6].mxu0  ;;  %v872_v49 = vpop.f32.mrb[6].mxu1  ;;  %v450_v58 = vadd.f32 %v1302_v16, %v449_v46  ;;  %v482_v1 = vadd.f32 %v1302_v16, %v481_v47 }
 0x151   : > { %541 = vadd.xlane.f32.xlu1 %v522_v44  ;;  %535 = vadd.xlane.f32.xlu0 %v519_v45  ;;  %v452_v50 = vpop.f32.mrb[7].mxu0  ;;  %v484_v51 = vpop.f32.mrb[7].mxu1  ;;  %v461_v55 = vadd.f32 %v864_v48, %v1302_v16  ;;  %v502_v60 = vmax.f32 %v458_v54, 0.0  ;;  %v493_v7 = vadd.f32 %v872_v49, %v1302_v16  ;;  %v510_v12 = vmax.f32 %v490_v6, 0.0 }
 0x152   : > { %v453_v62 = vadd.f32 %v1302_v16, %v452_v50  ;;  %v500_v0 = vmax.f32 %v450_v58, 0.0  ;;  %v485_v3 = vadd.f32 %v1302_v16, %v484_v51  ;;  %v508_v8 = vmax.f32 %v482_v1, 0.0 }
 0x153   : > { %v503_v61 = vmax.f32 %v461_v55, 0.0  ;;  %v525_v5 = vmul.f32 %v1310_v26, %v502_v60  ;;  %v511_v13 = vmax.f32 %v493_v7, 0.0  ;;  %v533_v16 = vmul.f32 %v1310_v26, %v510_v12 }
 0x154   : > { %v501_v2 = vmax.f32 %v453_v62, 0.0  ;;  %v509_v9 = vmax.f32 %v485_v3, 0.0  ;;  %v523_v11 = vmul.f32 %v1310_v26, %v500_v0  ;;  %v531_v15 = vmul.f32 %v1310_v26, %v508_v8 }
 0x155   : > { %557 = vadd.xlane.f32.xlu1 %v530_v56  ;;  %551 = vadd.xlane.f32.xlu0 %v527_v57  ;;  %v526_v4 = vmul.f32 %v1310_v26, %v503_v61  ;;  %v534_v17 = vmul.f32 %v1310_v26, %v511_v13 }
 0x156   : > { %v524_v10 = vmul.f32 %v1310_v26, %v501_v2  ;;  %v532_v14 = vmul.f32 %v1310_v26, %v509_v9 }
 0x159   : > { %553 = vadd.xlane.f32.xlu1 %v528_v59  ;;  %537 = vadd.xlane.f32.xlu0 %v520_v63 }
 0x15d   : > { %549 = vadd.xlane.f32.xlu1 %v526_v4  ;;  %547 = vadd.xlane.f32.xlu0 %v525_v5 }
 0x161   : > { %545 = vadd.xlane.f32.xlu1 %v524_v10  ;;  %543 = vadd.xlane.f32.xlu0 %v523_v11 }
 0x165   : > { %561 = vadd.xlane.f32.xlu1 %v532_v14  ;;  %559 = vadd.xlane.f32.xlu0 %v531_v15 }
 0x169   : > { %565 = vadd.xlane.f32.xlu1 %v534_v17  ;;  %563 = vadd.xlane.f32.xlu0 %v533_v16 }
 0x1da   : > { %v556_v19 = vpop.xlane.xlu0 %555  ;;  %v540_v20 = vpop.xlane.xlu1 %539 }
 0x1db   : > { %v579_v21 = vadd.f32 %v1341_v18, %v556_v19  ;;  %v571_v22 = vadd.f32 %v1341_v18, %v540_v20 }
 0x1dd   : > { %v816_v23 = vmul.f32 -1.442695, %v579_v21  ;;  %v808_v24 = vmul.f32 -1.442695, %v571_v22 }
 0x1de   : > { %v542_v25 = vpop.xlane.xlu1 %541  ;;  %v536_v27 = vpop.xlane.xlu0 %535 }
 0x1df   : > { %957 = vpow2.f32 %v816_v23  ;;  %v572_v28 = vadd.f32 %v1341_v18, %v542_v25  ;;  %v569_v26 = vadd.f32 %v1341_v18, %v536_v27 }
 0x1e0   : > { %959 = vpow2.f32 %v808_v24 }
 0x1e1   : > { %v809_v29 = vmul.f32 -1.442695, %v572_v28  ;;  %v806_v30 = vmul.f32 -1.442695, %v569_v26 }
 0x1e2   : > { %v558_v31 = vpop.xlane.xlu1 %557  ;;  %v552_v32 = vpop.xlane.xlu0 %551 }
 0x1e3   : > { %961 = vpow2.f32 %v809_v29  ;;  %v580_v33 = vadd.f32 %v1341_v18, %v558_v31  ;;  %v577_v34 = vadd.f32 %v1341_v18, %v552_v32 }
 0x1e4   : > { %963 = vpow2.f32 %v806_v30 }
 0x1e5   : > { %v817_v35 = vmul.f32 -1.442695, %v580_v33  ;;  %v814_v36 = vmul.f32 -1.442695, %v577_v34 }
 0x1e6   : > { %v554_v37 = vpop.xlane.xlu1 %553  ;;  %v538_v38 = vpop.xlane.xlu0 %537 }
 0x1e7   : > { %965 = vpow2.f32 %v817_v35  ;;  %v578_v39 = vadd.f32 %v1341_v18, %v554_v37  ;;  %v570_v40 = vadd.f32 %v1341_v18, %v538_v38 }
 0x1e8   : > { %967 = vpow2.f32 %v814_v36 }
 0x1e9   : > { %v958_v41 = vpop.eup %957  ;;  %v815_v42 = vmul.f32 -1.442695, %v578_v39  ;;  %v807_v45 = vmul.f32 -1.442695, %v570_v40 }
 0x1ea   : > { %v960_v43 = vpop.eup %959  ;;  %v643_v44 = vadd.f32 1.0, %v958_v41  ;;  %v550_v46 = vpop.xlane.xlu1 %549 }
 0x1eb   : > { %v548_v47 = vpop.xlane.xlu0 %547  ;;  %v635_v48 = vadd.f32 1.0, %v960_v43  ;;  %969 = vpow2.f32 %v815_v42  ;;  %v576_v49 = vadd.f32 %v1341_v18, %v550_v46 }
 0x1ec   : > { %v575_v50 = vadd.f32 %v1341_v18, %v548_v47  ;;  %971 = vrcp.f32 %v643_v44 }
 0x1ed   : > { %v962_v51 = vpop.eup %961  ;;  %973 = vrcp.f32 %v635_v48  ;;  %v813_v52 = vmul.f32 -1.442695, %v576_v49 }
 0x1ee   : > { %v964_v53 = vpop.eup %963  ;;  %v636_v54 = vadd.f32 1.0, %v962_v51  ;;  %975 = vpow2.f32 %v807_v45  ;;  %v812_v55 = vmul.f32 -1.442695, %v575_v50  ;;  %v546_v56 = vpop.xlane.xlu1 %545 }
 0x1ef   : > { %v544_v57 = vpop.xlane.xlu0 %543  ;;  %v633_v58 = vadd.f32 1.0, %v964_v53  ;;  %977 = vpow2.f32 %v813_v52  ;;  %v574_v59 = vadd.f32 %v1341_v18, %v546_v56 }
 0x1f0   : > { %v573_v60 = vadd.f32 %v1341_v18, %v544_v57  ;;  %979 = vrcp.f32 %v636_v54 }
 0x1f1   : > { %v966_v61 = vpop.eup %965  ;;  %981 = vrcp.f32 %v633_v58  ;;  %v811_v62 = vmul.f32 -1.442695, %v574_v59 }
 0x1f2   : > { %v968_v63 = vpop.eup %967  ;;  %v644_v0 = vadd.f32 1.0, %v966_v61  ;;  %983 = vpow2.f32 %v812_v55  ;;  %v810_v1 = vmul.f32 -1.442695, %v573_v60  ;;  %v562_v2 = vpop.xlane.xlu1 %561 }
 0x1f3   : > { %v560_v3 = vpop.xlane.xlu0 %559  ;;  %v641_v4 = vadd.f32 1.0, %v968_v63  ;;  %985 = vpow2.f32 %v811_v62  ;;  %v582_v5 = vadd.f32 %v1341_v18, %v562_v2 }
 0x1f4   : > { %v581_v6 = vadd.f32 %v1341_v18, %v560_v3  ;;  %987 = vrcp.f32 %v644_v0 }
 0x1f5   : > { %v970_v7 = vpop.eup %969  ;;  %989 = vrcp.f32 %v641_v4  ;;  %v819_v8 = vmul.f32 -1.442695, %v582_v5 }
 0x1f6   : > { %v818_v9 = vmul.f32 -1.442695, %v581_v6  ;;  %v972_v10 = vpop.eup %971  ;;  %v642_v11 = vadd.f32 1.0, %v970_v7  ;;  %991 = vpow2.f32 %v810_v1  ;;  %v566_v12 = vpop.xlane.xlu1 %565 }
 0x1f7   : > { %v564_v13 = vpop.xlane.xlu0 %563  ;;  %v974_v14 = vpop.eup %973  ;;  %692 = vst.msk [vmem:[%s1365_s6 + $0x50] sm:$0xff] %vm681_vm0, %v972_v10  ;;  %993 = vpow2.f32 %v819_v8  ;;  %v584_v15 = vadd.f32 %v1341_v18, %v566_v12 }
 0x1f8   : > { %v583_v17 = vadd.f32 %v1341_v18, %v564_v13  ;;  %v976_v16 = vpop.eup %975  ;;  %684 = vst.msk [vmem:[%s1365_s6 + $0x10] sm:$0xff] %vm681_vm0, %v974_v14  ;;  %995 = vrcp.f32 %v642_v11 }
 0x1f9   : > { %v978_v19 = vpop.eup %977  ;;  %v634_v20 = vadd.f32 1.0, %v976_v16  ;;  %997 = vpow2.f32 %v818_v9  ;;  %v821_v21 = vmul.f32 -1.442695, %v584_v15 }
 0x1fa   : > { %v980_v22 = vpop.eup %979  ;;  %v640_v23 = vadd.f32 1.0, %v978_v19  ;;  %v820_v24 = vmul.f32 -1.442695, %v583_v17 }
 0x1fb   : > { %v982_v25 = vpop.eup %981  ;;  %685 = vst.msk [vmem:[%s1365_s6 + $0x18] sm:$0xff] %vm681_vm0, %v980_v22  ;;  %999 = vrcp.f32 %v634_v20 }
 0x1fc   : > { %v984_v27 = vpop.eup %983  ;;  %682 = vst.msk [vmem:[%s1365_s6] sm:$0xff] %vm681_vm0, %v982_v25  ;;  %1001 = vrcp.f32 %v640_v23 }
 0x1fd   : > { %v986_v18 = vpop.eup %985  ;;  %v639_v28 = vadd.f32 1.0, %v984_v27  ;;  %1003 = vpow2.f32 %v821_v21 }
 0x1fe   : > { %v988_v26 = vpop.eup %987  ;;  %v638_v29 = vadd.f32 1.0, %v986_v18  ;;  %1005 = vpow2.f32 %v820_v24 }
 0x1ff   : > { %v990_v30 = vpop.eup %989  ;;  %693 = vst.msk [vmem:[%s1365_s6 + $0x58] sm:$0xff] %vm681_vm0, %v988_v26  ;;  %1007 = vrcp.f32 %v639_v28 }
 0x200   : > { %v992_v31 = vpop.eup %991  ;;  %690 = vst.msk [vmem:[%s1365_s6 + $0x40] sm:$0xff] %vm681_vm0, %v990_v30  ;;  %1009 = vrcp.f32 %v638_v29 }
 0x201   : > { %v994_v32 = vpop.eup %993  ;;  %v637_v33 = vadd.f32 1.0, %v992_v31 }
 0x202   : > { %v996_v34 = vpop.eup %995  ;;  %v646_v35 = vadd.f32 1.0, %v994_v32 }
 0x203   : > { %v998_v36 = vpop.eup %997  ;;  %691 = vst.msk [vmem:[%s1365_s6 + $0x48] sm:$0xff] %vm681_vm0, %v996_v34  ;;  %1011 = vrcp.f32 %v637_v33 }
 0x204   : > { %1013 = vrcp.f32 %v646_v35  ;;  %v645_v37 = vadd.f32 1.0, %v998_v36 }
 0x205   : > { %v1000_v38 = vpop.eup %999 }
 0x206   : > { %v1002_v39 = vpop.eup %1001  ;;  %683 = vst.msk [vmem:[%s1365_s6 + $0x8] sm:$0xff] %vm681_vm0, %v1000_v38  ;;  %1015 = vrcp.f32 %v645_v37 }
 0x207   : > { %v1004_v40 = vpop.eup %1003  ;;  %689 = vst.msk [vmem:[%s1365_s6 + $0x38] sm:$0xff] %vm681_vm0, %v1002_v39 }
 0x208   : > { %v1006_v41 = vpop.eup %1005  ;;  %v648_v42 = vadd.f32 1.0, %v1004_v40 }
 0x209   : > { %v1008_v43 = vpop.eup %1007  ;;  %v647_v44 = vadd.f32 1.0, %v1006_v41 }
 0x20a   : > { %v1010_v45 = vpop.eup %1009  ;;  %688 = vst.msk [vmem:[%s1365_s6 + $0x30] sm:$0xff] %vm681_vm0, %v1008_v43  ;;  %1017 = vrcp.f32 %v648_v42 }
 0x20b   : > { %687 = vst.msk [vmem:[%s1365_s6 + $0x28] sm:$0xff] %vm681_vm0, %v1010_v45  ;;  %1019 = vrcp.f32 %v647_v44 }
 0x20d   : > { %v1012_v46 = vpop.eup %1011 }
 0x20e   : > { %v1014_v47 = vpop.eup %1013  ;;  %686 = vst.msk [vmem:[%s1365_s6 + $0x20] sm:$0xff] %vm681_vm0, %v1012_v46 }
 0x20f   : > { %695 = vst.msk [vmem:[%s1365_s6 + $0x68] sm:$0xff] %vm681_vm0, %v1014_v47 }
 0x210   : > { %v1016_v48 = vpop.eup %1015 }
 0x211   : > { %694 = vst.msk [vmem:[%s1365_s6 + $0x60] sm:$0xff] %vm681_vm0, %v1016_v48 }
 0x214   : > { %v1018_v49 = vpop.eup %1017 }
 0x215   : > { %v1020_v50 = vpop.eup %1019  ;;  %697 = vst.msk [vmem:[%s1365_s6 + $0x78] sm:$0xff] %vm681_vm0, %v1018_v49 }
 0x216   : > { %696 = vst.msk [vmem:[%s1365_s6 + $0x70] sm:$0xff] %vm681_vm0, %v1020_v50 }
 0x217 PF: > { %s1432_s12 = smov %s1232_s20  ;;  %p17_p6 = scmp.ge.s32.totalorder %s1203_s30, 4  }
 0x218   : > { %s1433_s20 = smov %s1109_s21  ;;  %s1434_s21 = smov %s1113_s22 }
 0x219   : > { %s1435_s22 = smov %s1432_s12  ;;  %s1436_s23 = smov %s1203_s30 }
 0x21a   :  { %19 = sbr.rel (!%p17_p6) target bundleno = 6 (0x6), region = 84 }
 0x221   :  { %720 = vsyncpa [#allocation4], 1 }
 0x222   :  { %722 = vsyncpa [#allocation4 + $0x1], 1 }
 0x223   :  { %723 = vsyncpa [#allocation6], 1 }

</bundles_post_ra>
